<compile_context>
chip_gen: v5e
topology: v5e:2x2
jax: 0.10.0
libtpu: 0.0.40
codegen_flags: <defaults>
</compile_context>

<pallas_src>
import jax
import jax.numpy as jnp
from jax import lax
from jax.experimental import pallas as pl
from jax.experimental.pallas import tpu as pltpu


def _decoder_kernel(x_ref, wih_ref, whh_ref, bias_ref, lw_ref, lb_ref, out_ref):
    """Fused LSTM recurrence + batched output projection for one batch tile.

    x_ref   : (b_tile, T, E)   bf16  batch-major inputs (features ++ embeddings)
    wih_ref : (E, 4H)          bf16  fused gate weights, PyTorch order (i|f|g|o)
    whh_ref : (H, 4H)          bf16
    bias_ref: (1, 4H)          f32   b_ih + b_hh
    lw_ref  : (H, Vp)          bf16  lane-padded output projection
    lb_ref  : (1, Vp)          f32
    out_ref : (b_tile*T, Vp)   f32   batch-major logits
    """
    Bt, T, E = x_ref.shape
    H = whh_ref.shape[0]

    # ---- Hoisted, gate-fused input projection for ALL timesteps (one matmul) ----
    xg = (jnp.dot(x_ref[...].reshape(Bt * T, E), wih_ref[...],
                  preferred_element_type=jnp.float32)
          + bias_ref[...]).reshape(Bt, T, 4 * H)                 # (Bt, T, 4H) f32

    whh = whh_ref[...]

    # h/c are loop-carried values (vreg-resident); T is small and static, so a
    # fully unrolled Python loop lets us also keep every h_t live for the
    # batched projection below.
    h_bf = jnp.zeros((Bt, H), jnp.bfloat16)
    c = jnp.zeros((Bt, H), jnp.float32)
    hs = []
    for t in range(T):
        # Single fused recurrent matmul on the serial critical path.
        gates = xg[:, t, :] + jnp.dot(h_bf, whh,
                                      preferred_element_type=jnp.float32)  # (Bt, 4H)

        # Full-vreg sigmoid of the packed gates (one exp + one approx recip);
        # i/f/o are lane slices, g is a single tanh push.
        sig = pl.reciprocal(1.0 + jnp.exp(-gates), approx=True)
        i_g = sig[:, 0 * H:1 * H]
        f_g = sig[:, 1 * H:2 * H]
        o_g = sig[:, 3 * H:4 * H]
        g_g = jnp.tanh(gates[:, 2 * H:3 * H])

        c = f_g * c + i_g * g_g
        h = o_g * jnp.tanh(c)
        h_bf = h.astype(jnp.bfloat16)      # one cast per step, reused next step
        hs.append(h)

    # ---- Single batched output projection after the recurrence ----
    # (Bt, T, H) batch-major stack -> one MXU matmul -> one dense store.
    hstack = jnp.stack(hs, axis=1).astype(jnp.bfloat16).reshape(Bt * T, H)
    out_ref[...] = (jnp.dot(hstack, lw_ref[...],
                            preferred_element_type=jnp.float32)
                    + lb_ref[...])


def decoder_rnn_forward(features, captions, params, *, b_tile=None):
    """Equivalent of DecoderRNN.forward(features, captions) -> (B, T, V)."""
    embed_w = params["embed_w"]                      # (V, E)
    w_ih, w_hh = params["w_ih"], params["w_hh"]      # (4H, E), (4H, H)
    b_ih, b_hh = params["b_ih"], params["b_hh"]      # (4H,), (4H,)
    lin_w, lin_b = params["lin_w"], params["lin_b"]  # (V, H), (V,)

    B = features.shape[0]
    E = embed_w.shape[1]
    H = w_hh.shape[1]
    V = lin_w.shape[0]
    T = captions.shape[1]
    Vp = ((V + 127) // 128) * 128                    # lane-dense padded vocab

    # Batch tiling: <=2 tiles so v7x's two TensorCores each take half the batch.
    if b_tile is None:
        b_tile = B // 2 if (B >= 2 and B % 2 == 0) else B
    assert B % b_tile == 0
    n_tiles = B // b_tile

    # Glue (XLA): embedding gather + prepend image features, batch-major, bf16
    # before the concat.  Only the first T of the T+1 LSTM inputs can influence
    # LSTMResults[:, :-1, :], so the last caption embedding and the last LSTM
    # step are skipped entirely.
    emb = jnp.take(embed_w, captions[:, :T - 1], axis=0).astype(jnp.bfloat16)  # (B, T-1, E)
    feat = features.astype(jnp.bfloat16)[:, None, :]                           # (B, 1, E)
    x = jnp.concatenate([feat, emb], axis=1)                                   # (B, T, E)

    # Gate-fused weights, PyTorch gate order (i, f, g, o) preserved.
    wih_f = jnp.transpose(w_ih).astype(jnp.bfloat16)                           # (E, 4H)
    whh_f = jnp.transpose(w_hh).astype(jnp.bfloat16)                           # (H, 4H)
    bias = (b_ih + b_hh).astype(jnp.float32)[None, :]                          # (1, 4H)

    # Lane-padded output projection weights.
    lw = jnp.zeros((H, Vp), jnp.bfloat16).at[:, :V].set(
        jnp.transpose(lin_w).astype(jnp.bfloat16))                             # (H, Vp)
    lb = jnp.zeros((1, Vp), jnp.float32).at[0, :V].set(
        lin_b.astype(jnp.float32))                                             # (1, Vp)

    out = pl.pallas_call(
        _decoder_kernel,
        out_shape=jax.ShapeDtypeStruct((B * T, Vp), jnp.float32),
        grid_spec=pltpu.PrefetchScalarGridSpec(
            num_scalar_prefetch=0,
            grid=(n_tiles,),
            in_specs=[
                pl.BlockSpec((b_tile, T, E), lambda b: (b, 0, 0)),
                pl.BlockSpec((E, 4 * H), lambda b: (0, 0)),
                pl.BlockSpec((H, 4 * H), lambda b: (0, 0)),
                pl.BlockSpec((1, 4 * H), lambda b: (0, 0)),
                pl.BlockSpec((H, Vp), lambda b: (0, 0)),
                pl.BlockSpec((1, Vp), lambda b: (0, 0)),
            ],
            out_specs=pl.BlockSpec((b_tile * T, Vp), lambda b: (b, 0)),
        ),
        compiler_params=pltpu.CompilerParams(
            dimension_semantics=("parallel",)),
    )(x, wih_f, whh_f, bias, lw, lb)

    # Batch-major (B*T, Vp) -> (B, T, V): contiguous reshape (free), no transpose.
    return out.reshape(B, T, Vp)[:, :, :V]


def _reference_forward(features, captions, p):
    """Pure-JAX f32 reference replicating PyTorch semantics exactly."""
    emb = p["embed_w"][captions]
    x = jnp.concatenate([features[:, None, :], emb], axis=1)   # (B, T+1, E)
    B, T1, _ = x.shape
    H = p["w_hh"].shape[1]
    h = jnp.zeros((B, H), jnp.float32)
    c = jnp.zeros((B, H), jnp.float32)
    hs = []
    for t in range(T1):
        gates = x[:, t, :] @ p["w_ih"].T + h @ p["w_hh"].T + p["b_ih"] + p["b_hh"]
        i, f, g, o = jnp.split(gates, 4, axis=1)
        i, f, o = jax.nn.sigmoid(i), jax.nn.sigmoid(f), jax.nn.sigmoid(o)
        g = jnp.tanh(g)
        c = f * c + i * g
        h = o * jnp.tanh(c)
        hs.append(h)
    hseq = jnp.stack(hs, axis=1)                                # (B, T+1, H)
    return hseq[:, :-1, :] @ p["lin_w"].T + p["lin_b"]          # (B, T, V)


if __name__ == "__main__":
    embed_size, hidden_size, vocab_size = 32, 32, 64
    B, T = 2, 8

    key = jax.random.PRNGKey(0)
    keys = jax.random.split(key, 9)
    s = hidden_size ** -0.5  # PyTorch-style uniform(-1/sqrt(H), 1/sqrt(H))

    params = {
        "embed_w": 0.1 * jax.random.normal(keys[0], (vocab_size, embed_size), jnp.float32),
        "w_ih": jax.random.uniform(keys[1], (4 * hidden_size, embed_size), jnp.float32, -s, s),
        "w_hh": jax.random.uniform(keys[2], (4 * hidden_size, hidden_size), jnp.float32, -s, s),
        "b_ih": jax.random.uniform(keys[3], (4 * hidden_size,), jnp.float32, -s, s),
        "b_hh": jax.random.uniform(keys[4], (4 * hidden_size,), jnp.float32, -s, s),
        "lin_w": jax.random.uniform(keys[5], (vocab_size, hidden_size), jnp.float32, -s, s),
        "lin_b": jax.random.uniform(keys[6], (vocab_size,), jnp.float32, -s, s),
    }

    features = jax.random.normal(keys[7], (B, embed_size), jnp.float32)
    captions = jax.random.randint(keys[8], (B, T), 0, vocab_size, jnp.int32)

    out = decoder_rnn_forward(features, captions, params)
    out = jax.block_until_ready(out)
    assert out.shape == (B, T, vocab_size), out.shape

    ref = _reference_forward(features, captions, params)
    max_err = float(jnp.max(jnp.abs(out - ref)))
    # bf16 MXU matmuls (f32 accumulation) + approx-recip sigmoid vs pure-f32 reference.
    assert max_err < 5e-2, f"mismatch vs reference: {max_err}"

    print("KERNEL_OK")
</pallas_src>

<mosaic_0001>
module attributes {stable_mosaic.version = 11 : i64} {
  func.func @_decoder_kernel(%arg0: i32, %arg1: memref<1x8x32xbf16, #tpu.memory_space<vmem>>, %arg2: memref<32x128xbf16, #tpu.memory_space<vmem>>, %arg3: memref<32x128xbf16, #tpu.memory_space<vmem>>, %arg4: memref<1x128xf32, #tpu.memory_space<vmem>>, %arg5: memref<32x128xbf16, #tpu.memory_space<vmem>>, %arg6: memref<1x128xf32, #tpu.memory_space<vmem>>, %arg7: memref<8x128xf32, #tpu.memory_space<vmem>>) attributes {dimension_semantics = [#tpu.dimension_semantics<parallel>], iteration_bounds = array<i64: 2>, scalar_prefetch = 0 : i64, scratch_operands = 0 : i64, tpu.core_type = #tpu.core_type<tc>, window_params = [{transform_indices = @transform_0, window_bounds = array<i64: 1, 8, 32>}, {pipeline_mode = #tpu.pipeline_mode<synchronous>, transform_indices = @transform_1, window_bounds = array<i64: 32, 128>}, {pipeline_mode = #tpu.pipeline_mode<synchronous>, transform_indices = @transform_2, window_bounds = array<i64: 32, 128>}, {pipeline_mode = #tpu.pipeline_mode<synchronous>, transform_indices = @transform_3, window_bounds = array<i64: 1, 128>}, {pipeline_mode = #tpu.pipeline_mode<synchronous>, transform_indices = @transform_4, window_bounds = array<i64: 32, 128>}, {pipeline_mode = #tpu.pipeline_mode<synchronous>, transform_indices = @transform_5, window_bounds = array<i64: 1, 128>}, {transform_indices = @transform_6, window_bounds = array<i64: 8, 128>}]} {
    %c0 = arith.constant 0 : index
    %c0_0 = arith.constant 0 : index
    %c0_1 = arith.constant 0 : index
    %0 = vector.load %arg1[%c0, %c0_0, %c0_1] : memref<1x8x32xbf16, #tpu.memory_space<vmem>>, vector<1x8x32xbf16>
    %1 = vector.shape_cast %0 : vector<1x8x32xbf16> to vector<8x32xbf16>
    %c0_2 = arith.constant 0 : index
    %c0_3 = arith.constant 0 : index
    %2 = vector.load %arg2[%c0_2, %c0_3] : memref<32x128xbf16, #tpu.memory_space<vmem>>, vector<32x128xbf16>
    %cst = arith.constant dense<0.000000e+00> : vector<8x128xf32>
    %3 = tpu.matmul %1, %2, %cst {dimension_numbers = #tpu.dot_dimension_numbers<[1], [0], [0], [1], [0, 0, 1, 1], [], []>} : vector<8x32xbf16>, vector<32x128xbf16>, vector<8x128xf32> -> vector<8x128xf32>
    %c0_4 = arith.constant 0 : index
    %c0_5 = arith.constant 0 : index
    %4 = vector.load %arg4[%c0_4, %c0_5] : memref<1x128xf32, #tpu.memory_space<vmem>>, vector<1x128xf32>
    %5 = vector.broadcast %4 : vector<1x128xf32> to vector<8x128xf32>
    %6 = arith.addf %3, %5 : vector<8x128xf32>
    %7 = vector.shape_cast %6 : vector<8x128xf32> to vector<1x8x128xf32>
    %c0_6 = arith.constant 0 : index
    %c0_7 = arith.constant 0 : index
    %8 = vector.load %arg3[%c0_6, %c0_7] : memref<32x128xbf16, #tpu.memory_space<vmem>>, vector<32x128xbf16>
    %cst_8 = arith.constant 0.000000e+00 : bf16
    %9 = vector.broadcast %cst_8 : bf16 to vector<1x32xbf16>
    %cst_9 = arith.constant 0.000000e+00 : f32
    %10 = vector.broadcast %cst_9 : f32 to vector<1x32xf32>
    %11 = vector.extract_strided_slice %7 {offsets = [0, 0, 0], sizes = [1, 1, 128], strides = [1, 1, 1]} : vector<1x8x128xf32> to vector<1x1x128xf32>
    %12 = vector.shape_cast %11 : vector<1x1x128xf32> to vector<1x128xf32>
    %cst_10 = arith.constant dense<0.000000e+00> : vector<1x128xf32>
    %13 = tpu.matmul %9, %8, %cst_10 {dimension_numbers = #tpu.dot_dimension_numbers<[1], [0], [0], [1], [0, 0, 1, 1], [], []>} : vector<1x32xbf16>, vector<32x128xbf16>, vector<1x128xf32> -> vector<1x128xf32>
    %14 = arith.addf %12, %13 : vector<1x128xf32>
    %cst_11 = arith.constant 0.000000e+00 : f32
    %15 = vector.broadcast %cst_11 : f32 to vector<1x128xf32>
    %16 = arith.subf %15, %14 : vector<1x128xf32>
    %17 = math.exp %16 : vector<1x128xf32>
    %cst_12 = arith.constant 1.000000e+00 : f32
    %18 = vector.broadcast %cst_12 : f32 to vector<1x128xf32>
    %19 = arith.addf %18, %17 : vector<1x128xf32>
    %20 = tpu.reciprocal %19 {approx = true} : vector<1x128xf32> -> vector<1x128xf32>
    %21 = vector.extract_strided_slice %20 {offsets = [0, 0], sizes = [1, 32], strides = [1, 1]} : vector<1x128xf32> to vector<1x32xf32>
    %22 = vector.extract_strided_slice %20 {offsets = [0, 32], sizes = [1, 32], strides = [1, 1]} : vector<1x128xf32> to vector<1x32xf32>
    %23 = vector.extract_strided_slice %20 {offsets = [0, 96], sizes = [1, 32], strides = [1, 1]} : vector<1x128xf32> to vector<1x32xf32>
    %24 = vector.extract_strided_slice %14 {offsets = [0, 64], sizes = [1, 32], strides = [1, 1]} : vector<1x128xf32> to vector<1x32xf32>
    %25 = math.tanh %24 : vector<1x32xf32>
    %26 = arith.mulf %22, %10 : vector<1x32xf32>
    %27 = arith.mulf %21, %25 : vector<1x32xf32>
    %28 = arith.addf %26, %27 : vector<1x32xf32>
    %29 = math.tanh %28 : vector<1x32xf32>
    %30 = arith.mulf %23, %29 : vector<1x32xf32>
    %31 = arith.truncf %30 : vector<1x32xf32> to vector<1x32xbf16>
    %32 = vector.extract_strided_slice %7 {offsets = [0, 1, 0], sizes = [1, 1, 128], strides = [1, 1, 1]} : vector<1x8x128xf32> to vector<1x1x128xf32>
    %33 = vector.shape_cast %32 : vector<1x1x128xf32> to vector<1x128xf32>
    %cst_13 = arith.constant dense<0.000000e+00> : vector<1x128xf32>
    %34 = tpu.matmul %31, %8, %cst_13 {dimension_numbers = #tpu.dot_dimension_numbers<[1], [0], [0], [1], [0, 0, 1, 1], [], []>} : vector<1x32xbf16>, vector<32x128xbf16>, vector<1x128xf32> -> vector<1x128xf32>
    %35 = arith.addf %33, %34 : vector<1x128xf32>
    %cst_14 = arith.constant 0.000000e+00 : f32
    %36 = vector.broadcast %cst_14 : f32 to vector<1x128xf32>
    %37 = arith.subf %36, %35 : vector<1x128xf32>
    %38 = math.exp %37 : vector<1x128xf32>
    %cst_15 = arith.constant 1.000000e+00 : f32
    %39 = vector.broadcast %cst_15 : f32 to vector<1x128xf32>
    %40 = arith.addf %39, %38 : vector<1x128xf32>
    %41 = tpu.reciprocal %40 {approx = true} : vector<1x128xf32> -> vector<1x128xf32>
    %42 = vector.extract_strided_slice %41 {offsets = [0, 0], sizes = [1, 32], strides = [1, 1]} : vector<1x128xf32> to vector<1x32xf32>
    %43 = vector.extract_strided_slice %41 {offsets = [0, 32], sizes = [1, 32], strides = [1, 1]} : vector<1x128xf32> to vector<1x32xf32>
    %44 = vector.extract_strided_slice %41 {offsets = [0, 96], sizes = [1, 32], strides = [1, 1]} : vector<1x128xf32> to vector<1x32xf32>
    %45 = vector.extract_strided_slice %35 {offsets = [0, 64], sizes = [1, 32], strides = [1, 1]} : vector<1x128xf32> to vector<1x32xf32>
    %46 = math.tanh %45 : vector<1x32xf32>
    %47 = arith.mulf %43, %28 : vector<1x32xf32>
    %48 = arith.mulf %42, %46 : vector<1x32xf32>
    %49 = arith.addf %47, %48 : vector<1x32xf32>
    %50 = math.tanh %49 : vector<1x32xf32>
    %51 = arith.mulf %44, %50 : vector<1x32xf32>
    %52 = arith.truncf %51 : vector<1x32xf32> to vector<1x32xbf16>
    %53 = vector.extract_strided_slice %7 {offsets = [0, 2, 0], sizes = [1, 1, 128], strides = [1, 1, 1]} : vector<1x8x128xf32> to vector<1x1x128xf32>
    %54 = vector.shape_cast %53 : vector<1x1x128xf32> to vector<1x128xf32>
    %cst_16 = arith.constant dense<0.000000e+00> : vector<1x128xf32>
    %55 = tpu.matmul %52, %8, %cst_16 {dimension_numbers = #tpu.dot_dimension_numbers<[1], [0], [0], [1], [0, 0, 1, 1], [], []>} : vector<1x32xbf16>, vector<32x128xbf16>, vector<1x128xf32> -> vector<1x128xf32>
    %56 = arith.addf %54, %55 : vector<1x128xf32>
    %cst_17 = arith.constant 0.000000e+00 : f32
    %57 = vector.broadcast %cst_17 : f32 to vector<1x128xf32>
    %58 = arith.subf %57, %56 : vector<1x128xf32>
    %59 = math.exp %58 : vector<1x128xf32>
    %cst_18 = arith.constant 1.000000e+00 : f32
    %60 = vector.broadcast %cst_18 : f32 to vector<1x128xf32>
    %61 = arith.addf %60, %59 : vector<1x128xf32>
    %62 = tpu.reciprocal %61 {approx = true} : vector<1x128xf32> -> vector<1x128xf32>
    %63 = vector.extract_strided_slice %62 {offsets = [0, 0], sizes = [1, 32], strides = [1, 1]} : vector<1x128xf32> to vector<1x32xf32>
    %64 = vector.extract_strided_slice %62 {offsets = [0, 32], sizes = [1, 32], strides = [1, 1]} : vector<1x128xf32> to vector<1x32xf32>
    %65 = vector.extract_strided_slice %62 {offsets = [0, 96], sizes = [1, 32], strides = [1, 1]} : vector<1x128xf32> to vector<1x32xf32>
    %66 = vector.extract_strided_slice %56 {offsets = [0, 64], sizes = [1, 32], strides = [1, 1]} : vector<1x128xf32> to vector<1x32xf32>
    %67 = math.tanh %66 : vector<1x32xf32>
    %68 = arith.mulf %64, %49 : vector<1x32xf32>
    %69 = arith.mulf %63, %67 : vector<1x32xf32>
    %70 = arith.addf %68, %69 : vector<1x32xf32>
    %71 = math.tanh %70 : vector<1x32xf32>
    %72 = arith.mulf %65, %71 : vector<1x32xf32>
    %73 = arith.truncf %72 : vector<1x32xf32> to vector<1x32xbf16>
    %74 = vector.extract_strided_slice %7 {offsets = [0, 3, 0], sizes = [1, 1, 128], strides = [1, 1, 1]} : vector<1x8x128xf32> to vector<1x1x128xf32>
    %75 = vector.shape_cast %74 : vector<1x1x128xf32> to vector<1x128xf32>
    %cst_19 = arith.constant dense<0.000000e+00> : vector<1x128xf32>
    %76 = tpu.matmul %73, %8, %cst_19 {dimension_numbers = #tpu.dot_dimension_numbers<[1], [0], [0], [1], [0, 0, 1, 1], [], []>} : vector<1x32xbf16>, vector<32x128xbf16>, vector<1x128xf32> -> vector<1x128xf32>
    %77 = arith.addf %75, %76 : vector<1x128xf32>
    %cst_20 = arith.constant 0.000000e+00 : f32
    %78 = vector.broadcast %cst_20 : f32 to vector<1x128xf32>
    %79 = arith.subf %78, %77 : vector<1x128xf32>
    %80 = math.exp %79 : vector<1x128xf32>
    %cst_21 = arith.constant 1.000000e+00 : f32
    %81 = vector.broadcast %cst_21 : f32 to vector<1x128xf32>
    %82 = arith.addf %81, %80 : vector<1x128xf32>
    %83 = tpu.reciprocal %82 {approx = true} : vector<1x128xf32> -> vector<1x128xf32>
    %84 = vector.extract_strided_slice %83 {offsets = [0, 0], sizes = [1, 32], strides = [1, 1]} : vector<1x128xf32> to vector<1x32xf32>
    %85 = vector.extract_strided_slice %83 {offsets = [0, 32], sizes = [1, 32], strides = [1, 1]} : vector<1x128xf32> to vector<1x32xf32>
    %86 = vector.extract_strided_slice %83 {offsets = [0, 96], sizes = [1, 32], strides = [1, 1]} : vector<1x128xf32> to vector<1x32xf32>
    %87 = vector.extract_strided_slice %77 {offsets = [0, 64], sizes = [1, 32], strides = [1, 1]} : vector<1x128xf32> to vector<1x32xf32>
    %88 = math.tanh %87 : vector<1x32xf32>
    %89 = arith.mulf %85, %70 : vector<1x32xf32>
    %90 = arith.mulf %84, %88 : vector<1x32xf32>
    %91 = arith.addf %89, %90 : vector<1x32xf32>
    %92 = math.tanh %91 : vector<1x32xf32>
    %93 = arith.mulf %86, %92 : vector<1x32xf32>
    %94 = arith.truncf %93 : vector<1x32xf32> to vector<1x32xbf16>
    %95 = vector.extract_strided_slice %7 {offsets = [0, 4, 0], sizes = [1, 1, 128], strides = [1, 1, 1]} : vector<1x8x128xf32> to vector<1x1x128xf32>
    %96 = vector.shape_cast %95 : vector<1x1x128xf32> to vector<1x128xf32>
    %cst_22 = arith.constant dense<0.000000e+00> : vector<1x128xf32>
    %97 = tpu.matmul %94, %8, %cst_22 {dimension_numbers = #tpu.dot_dimension_numbers<[1], [0], [0], [1], [0, 0, 1, 1], [], []>} : vector<1x32xbf16>, vector<32x128xbf16>, vector<1x128xf32> -> vector<1x128xf32>
    %98 = arith.addf %96, %97 : vector<1x128xf32>
    %cst_23 = arith.constant 0.000000e+00 : f32
    %99 = vector.broadcast %cst_23 : f32 to vector<1x128xf32>
    %100 = arith.subf %99, %98 : vector<1x128xf32>
    %101 = math.exp %100 : vector<1x128xf32>
    %cst_24 = arith.constant 1.000000e+00 : f32
    %102 = vector.broadcast %cst_24 : f32 to vector<1x128xf32>
    %103 = arith.addf %102, %101 : vector<1x128xf32>
    %104 = tpu.reciprocal %103 {approx = true} : vector<1x128xf32> -> vector<1x128xf32>
    %105 = vector.extract_strided_slice %104 {offsets = [0, 0], sizes = [1, 32], strides = [1, 1]} : vector<1x128xf32> to vector<1x32xf32>
    %106 = vector.extract_strided_slice %104 {offsets = [0, 32], sizes = [1, 32], strides = [1, 1]} : vector<1x128xf32> to vector<1x32xf32>
    %107 = vector.extract_strided_slice %104 {offsets = [0, 96], sizes = [1, 32], strides = [1, 1]} : vector<1x128xf32> to vector<1x32xf32>
    %108 = vector.extract_strided_slice %98 {offsets = [0, 64], sizes = [1, 32], strides = [1, 1]} : vector<1x128xf32> to vector<1x32xf32>
    %109 = math.tanh %108 : vector<1x32xf32>
    %110 = arith.mulf %106, %91 : vector<1x32xf32>
    %111 = arith.mulf %105, %109 : vector<1x32xf32>
    %112 = arith.addf %110, %111 : vector<1x32xf32>
    %113 = math.tanh %112 : vector<1x32xf32>
    %114 = arith.mulf %107, %113 : vector<1x32xf32>
    %115 = arith.truncf %114 : vector<1x32xf32> to vector<1x32xbf16>
    %116 = vector.extract_strided_slice %7 {offsets = [0, 5, 0], sizes = [1, 1, 128], strides = [1, 1, 1]} : vector<1x8x128xf32> to vector<1x1x128xf32>
    %117 = vector.shape_cast %116 : vector<1x1x128xf32> to vector<1x128xf32>
    %cst_25 = arith.constant dense<0.000000e+00> : vector<1x128xf32>
    %118 = tpu.matmul %115, %8, %cst_25 {dimension_numbers = #tpu.dot_dimension_numbers<[1], [0], [0], [1], [0, 0, 1, 1], [], []>} : vector<1x32xbf16>, vector<32x128xbf16>, vector<1x128xf32> -> vector<1x128xf32>
    %119 = arith.addf %117, %118 : vector<1x128xf32>
    %cst_26 = arith.constant 0.000000e+00 : f32
    %120 = vector.broadcast %cst_26 : f32 to vector<1x128xf32>
    %121 = arith.subf %120, %119 : vector<1x128xf32>
    %122 = math.exp %121 : vector<1x128xf32>
    %cst_27 = arith.constant 1.000000e+00 : f32
    %123 = vector.broadcast %cst_27 : f32 to vector<1x128xf32>
    %124 = arith.addf %123, %122 : vector<1x128xf32>
    %125 = tpu.reciprocal %124 {approx = true} : vector<1x128xf32> -> vector<1x128xf32>
    %126 = vector.extract_strided_slice %125 {offsets = [0, 0], sizes = [1, 32], strides = [1, 1]} : vector<1x128xf32> to vector<1x32xf32>
    %127 = vector.extract_strided_slice %125 {offsets = [0, 32], sizes = [1, 32], strides = [1, 1]} : vector<1x128xf32> to vector<1x32xf32>
    %128 = vector.extract_strided_slice %125 {offsets = [0, 96], sizes = [1, 32], strides = [1, 1]} : vector<1x128xf32> to vector<1x32xf32>
    %129 = vector.extract_strided_slice %119 {offsets = [0, 64], sizes = [1, 32], strides = [1, 1]} : vector<1x128xf32> to vector<1x32xf32>
    %130 = math.tanh %129 : vector<1x32xf32>
    %131 = arith.mulf %127, %112 : vector<1x32xf32>
    %132 = arith.mulf %126, %130 : vector<1x32xf32>
    %133 = arith.addf %131, %132 : vector<1x32xf32>
    %134 = math.tanh %133 : vector<1x32xf32>
    %135 = arith.mulf %128, %134 : vector<1x32xf32>
    %136 = arith.truncf %135 : vector<1x32xf32> to vector<1x32xbf16>
    %137 = vector.extract_strided_slice %7 {offsets = [0, 6, 0], sizes = [1, 1, 128], strides = [1, 1, 1]} : vector<1x8x128xf32> to vector<1x1x128xf32>
    %138 = vector.shape_cast %137 : vector<1x1x128xf32> to vector<1x128xf32>
    %cst_28 = arith.constant dense<0.000000e+00> : vector<1x128xf32>
    %139 = tpu.matmul %136, %8, %cst_28 {dimension_numbers = #tpu.dot_dimension_numbers<[1], [0], [0], [1], [0, 0, 1, 1], [], []>} : vector<1x32xbf16>, vector<32x128xbf16>, vector<1x128xf32> -> vector<1x128xf32>
    %140 = arith.addf %138, %139 : vector<1x128xf32>
    %cst_29 = arith.constant 0.000000e+00 : f32
    %141 = vector.broadcast %cst_29 : f32 to vector<1x128xf32>
    %142 = arith.subf %141, %140 : vector<1x128xf32>
    %143 = math.exp %142 : vector<1x128xf32>
    %cst_30 = arith.constant 1.000000e+00 : f32
    %144 = vector.broadcast %cst_30 : f32 to vector<1x128xf32>
    %145 = arith.addf %144, %143 : vector<1x128xf32>
    %146 = tpu.reciprocal %145 {approx = true} : vector<1x128xf32> -> vector<1x128xf32>
    %147 = vector.extract_strided_slice %146 {offsets = [0, 0], sizes = [1, 32], strides = [1, 1]} : vector<1x128xf32> to vector<1x32xf32>
    %148 = vector.extract_strided_slice %146 {offsets = [0, 32], sizes = [1, 32], strides = [1, 1]} : vector<1x128xf32> to vector<1x32xf32>
    %149 = vector.extract_strided_slice %146 {offsets = [0, 96], sizes = [1, 32], strides = [1, 1]} : vector<1x128xf32> to vector<1x32xf32>
    %150 = vector.extract_strided_slice %140 {offsets = [0, 64], sizes = [1, 32], strides = [1, 1]} : vector<1x128xf32> to vector<1x32xf32>
    %151 = math.tanh %150 : vector<1x32xf32>
    %152 = arith.mulf %148, %133 : vector<1x32xf32>
    %153 = arith.mulf %147, %151 : vector<1x32xf32>
    %154 = arith.addf %152, %153 : vector<1x32xf32>
    %155 = math.tanh %154 : vector<1x32xf32>
    %156 = arith.mulf %149, %155 : vector<1x32xf32>
    %157 = arith.truncf %156 : vector<1x32xf32> to vector<1x32xbf16>
    %158 = vector.extract_strided_slice %7 {offsets = [0, 7, 0], sizes = [1, 1, 128], strides = [1, 1, 1]} : vector<1x8x128xf32> to vector<1x1x128xf32>
    %159 = vector.shape_cast %158 : vector<1x1x128xf32> to vector<1x128xf32>
    %cst_31 = arith.constant dense<0.000000e+00> : vector<1x128xf32>
    %160 = tpu.matmul %157, %8, %cst_31 {dimension_numbers = #tpu.dot_dimension_numbers<[1], [0], [0], [1], [0, 0, 1, 1], [], []>} : vector<1x32xbf16>, vector<32x128xbf16>, vector<1x128xf32> -> vector<1x128xf32>
    %161 = arith.addf %159, %160 : vector<1x128xf32>
    %cst_32 = arith.constant 0.000000e+00 : f32
    %162 = vector.broadcast %cst_32 : f32 to vector<1x128xf32>
    %163 = arith.subf %162, %161 : vector<1x128xf32>
    %164 = math.exp %163 : vector<1x128xf32>
    %cst_33 = arith.constant 1.000000e+00 : f32
    %165 = vector.broadcast %cst_33 : f32 to vector<1x128xf32>
    %166 = arith.addf %165, %164 : vector<1x128xf32>
    %167 = tpu.reciprocal %166 {approx = true} : vector<1x128xf32> -> vector<1x128xf32>
    %168 = vector.extract_strided_slice %167 {offsets = [0, 0], sizes = [1, 32], strides = [1, 1]} : vector<1x128xf32> to vector<1x32xf32>
    %169 = vector.extract_strided_slice %167 {offsets = [0, 32], sizes = [1, 32], strides = [1, 1]} : vector<1x128xf32> to vector<1x32xf32>
    %170 = vector.extract_strided_slice %167 {offsets = [0, 96], sizes = [1, 32], strides = [1, 1]} : vector<1x128xf32> to vector<1x32xf32>
    %171 = vector.extract_strided_slice %161 {offsets = [0, 64], sizes = [1, 32], strides = [1, 1]} : vector<1x128xf32> to vector<1x32xf32>
    %172 = math.tanh %171 : vector<1x32xf32>
    %173 = arith.mulf %169, %154 : vector<1x32xf32>
    %174 = arith.mulf %168, %172 : vector<1x32xf32>
    %175 = arith.addf %173, %174 : vector<1x32xf32>
    %176 = math.tanh %175 : vector<1x32xf32>
    %177 = arith.mulf %170, %176 : vector<1x32xf32>
    %178 = vector.shape_cast %30 : vector<1x32xf32> to vector<1x1x32xf32>
    %179 = vector.shape_cast %51 : vector<1x32xf32> to vector<1x1x32xf32>
    %180 = vector.shape_cast %72 : vector<1x32xf32> to vector<1x1x32xf32>
    %181 = vector.shape_cast %93 : vector<1x32xf32> to vector<1x1x32xf32>
    %182 = vector.shape_cast %114 : vector<1x32xf32> to vector<1x1x32xf32>
    %183 = vector.shape_cast %135 : vector<1x32xf32> to vector<1x1x32xf32>
    %184 = vector.shape_cast %156 : vector<1x32xf32> to vector<1x1x32xf32>
    %185 = vector.shape_cast %177 : vector<1x32xf32> to vector<1x1x32xf32>
    %186 = tpu.concatenate %178, %179, %180, %181, %182, %183, %184, %185 in 1 : vector<1x1x32xf32>, vector<1x1x32xf32>, vector<1x1x32xf32>, vector<1x1x32xf32>, vector<1x1x32xf32>, vector<1x1x32xf32>, vector<1x1x32xf32>, vector<1x1x32xf32> -> vector<1x8x32xf32>
    %187 = arith.truncf %186 : vector<1x8x32xf32> to vector<1x8x32xbf16>
    %188 = vector.shape_cast %187 : vector<1x8x32xbf16> to vector<8x32xbf16>
    %c0_34 = arith.constant 0 : index
    %c0_35 = arith.constant 0 : index
    %189 = vector.load %arg5[%c0_34, %c0_35] : memref<32x128xbf16, #tpu.memory_space<vmem>>, vector<32x128xbf16>
    %cst_36 = arith.constant dense<0.000000e+00> : vector<8x128xf32>
    %190 = tpu.matmul %188, %189, %cst_36 {dimension_numbers = #tpu.dot_dimension_numbers<[1], [0], [0], [1], [0, 0, 1, 1], [], []>} : vector<8x32xbf16>, vector<32x128xbf16>, vector<8x128xf32> -> vector<8x128xf32>
    %c0_37 = arith.constant 0 : index
    %c0_38 = arith.constant 0 : index
    %191 = vector.load %arg6[%c0_37, %c0_38] : memref<1x128xf32, #tpu.memory_space<vmem>>, vector<1x128xf32>
    %192 = vector.broadcast %191 : vector<1x128xf32> to vector<8x128xf32>
    %193 = arith.addf %190, %192 : vector<8x128xf32>
    %c0_39 = arith.constant 0 : index
    %c0_40 = arith.constant 0 : index
    %194 = vector.load %arg7[%c0_39, %c0_40] : memref<8x128xf32, #tpu.memory_space<vmem>>, vector<8x128xf32>
    tpu.vector_store %arg7[%c0_39, %c0_40], %193 {strides = array<i32>} : memref<8x128xf32, #tpu.memory_space<vmem>>, vector<8x128xf32>,
    return
  }
  func.func @transform_0(%arg0: i32) -> (i32, i32, i32) {
    %c0_i32 = arith.constant 0 : i32
    %c0_i32_0 = arith.constant 0 : i32
    %c0_i32_1 = arith.constant 0 : i32
    return %arg0, %c0_i32, %c0_i32_0 : i32, i32, i32
  }
  func.func @transform_1(%arg0: i32) -> (i32, i32) {
    %c0_i32 = arith.constant 0 : i32
    %c0_i32_0 = arith.constant 0 : i32
    %c0_i32_1 = arith.constant 0 : i32
    return %c0_i32, %c0_i32_0 : i32, i32
  }
  func.func @transform_2(%arg0: i32) -> (i32, i32) {
    %c0_i32 = arith.constant 0 : i32
    %c0_i32_0 = arith.constant 0 : i32
    %c0_i32_1 = arith.constant 0 : i32
    return %c0_i32, %c0_i32_0 : i32, i32
  }
  func.func @transform_3(%arg0: i32) -> (i32, i32) {
    %c0_i32 = arith.constant 0 : i32
    %c0_i32_0 = arith.constant 0 : i32
    %c0_i32_1 = arith.constant 0 : i32
    return %c0_i32, %c0_i32_0 : i32, i32
  }
  func.func @transform_4(%arg0: i32) -> (i32, i32) {
    %c0_i32 = arith.constant 0 : i32
    %c0_i32_0 = arith.constant 0 : i32
    %c0_i32_1 = arith.constant 0 : i32
    return %c0_i32, %c0_i32_0 : i32, i32
  }
  func.func @transform_5(%arg0: i32) -> (i32, i32) {
    %c0_i32 = arith.constant 0 : i32
    %c0_i32_0 = arith.constant 0 : i32
    %c0_i32_1 = arith.constant 0 : i32
    return %c0_i32, %c0_i32_0 : i32, i32
  }
  func.func @transform_6(%arg0: i32) -> (i32, i32) {
    %c0_i32 = arith.constant 0 : i32
    %c0_i32_0 = arith.constant 0 : i32
    return %arg0, %c0_i32 : i32, i32
  }
}

</mosaic_0001>

<bundles_post_ra>
// kernel: tpu_custom_call.1
= control target key start
LH: loop header
LB: loop body
LE: loop exit
PB: predicated region body
PF: predicated region fallthrough
CT: control target
= control target key end

     0   :  { %11 = vsyncpa [#allocation3], 0  ;;  %s1610_s0 = inlined_call_operand.hbm [shape: bf16[2,8,32], index: 0, kind: input, shape index: {}]   ;;  %s1611_s1 = inlined_call_operand.hbm [shape: bf16[32,128], index: 1, kind: input, shape index: {}]   ;;  %s1612_s2 = inlined_call_operand.hbm [shape: bf16[32,128], index: 2, kind: input, shape index: {}]   ;;  %s1613_s3 = inlined_call_operand.vmem [shape: f32[1,128], index: 3, kind: input, shape index: {}]   ;;  %s1614_s4 = inlined_call_operand.hbm [shape: bf16[32,128], index: 4, kind: input, shape index: {}]   ;;  %s1615_s5 = inlined_call_operand.vmem [shape: f32[1,128], index: 5, kind: input, shape index: {}]   ;;  %s1616_s6 = inlined_call_operand.hbm [shape: f32[16,128], index: 6, kind: output, shape index: {}]  }
   0x1   :  { %13 = vsyncpa [#allocation3 + $0x1], 0 }
   0x2   :  { %14 = vsyncpa [#allocation6], 0 }
   0x3   :  { %15 = vsyncpa [#allocation9], 0 }
   0x4   :  { %16 = vsyncpa [#allocation4], 0 }
   0x5   :  { %18 = vsyncpa [#allocation4 + $0x1], 0  ;;  %s1391_s21 = smov 0   ;;  %s1393_s22 = smov 0  }
   0x6   :  { %s1395_s23 = smov 0   ;;  %s1397_s24 = smov 0  }
   0x7 LB: > { %s197_s27 = sshll.u32 %s1611_s1, 4  ;;  %s1415_s28 = sadd.s32 4294967295, %s1346_s24   ;;  %s1346_s24 = sphi %s1397_s24, %s1627_s24   ;;  %s1342_s23 = sphi %s1395_s23, %s1626_s23   ;;  %s1338_s22 = sphi %s1393_s22, %s1625_s22   ;;  %s1334_s21 = sphi %s1391_s21, %s1624_s21   ;;  %s198_s27 = int_to_ptr.hbm [resolvable:$true] %s197_s27 }
   0x8   : > { %p948_p0 = scmp.ge.s32.totalorder %s1346_s24, 1  ;;  %p45_p1 = scmp.eq.s32.totalorder %s1415_s28, 0 }
   0x9   : > { %p186_p2 = scmp.lt.s32.totalorder %s1346_s24, 3  ;;  %s1348_s30 = smov [#allocation5]  }
   0xa   : > { %s199_s7 = sshll.u32 %s1348_s30, 4  ;;  %s211_s10 = sshll.u32 %s1612_s2, 4  ;;  %s200_s7 = int_to_ptr.vmem [resolvable:$true] %s199_s7  ;;  %s212_s10 = int_to_ptr.hbm [resolvable:$true] %s211_s10 }
   0xb   : > { %p1420_p3 = pnand %p948_p0, %p186_p2  ;;  %s228_s14 = sshll.u32 %s1614_s4, 4  ;;  %s229_s14 = int_to_ptr.hbm [resolvable:$true] %s228_s14 }
   0xc   : > { %s1349_s15 = smov [#allocation7]   ;;  %s1350_s17 = smov 64  }
   0xd   : > { %p1020_p4 = pneg %p1420_p3  ;;  %s213_s16 = sshll.u32 %s1349_s15, 4  ;;  %s214_s16 = int_to_ptr.vmem [resolvable:$true] %s213_s16 }
   0xe   : > { %s1351_s18 = smov 4   ;;  %s1352_s19 = smov [#allocation8]  }
   0xf   : > { %p1432_p6 = pnand %p1020_p4, %p45_p1  ;;  %s230_s20 = sshll.u32 %s1352_s19, 4  ;;  %s231_s20 = int_to_ptr.vmem [resolvable:$true] %s230_s20 }
  0x10   : > { %s947_s25 = sadd.s32 4294967294, %s1346_s24   ;;  %s1447_s26 = sadd.s32 1, %s1346_s24  }
  0x11   : > { %1023 = dma.hbm_to_vmem [thread:$0]  (!%p1432_p6), %s198_s27, 256, %s200_s7, [#allocation6], %s1350_s17, %s1350_s17, %s1351_s18  }
  0x12   : > { %1026 = dma.hbm_to_vmem [thread:$0]  (!%p1432_p6), %s212_s10, 256, %s214_s16, [#allocation6], %s1350_s17, %s1350_s17, %s1351_s18  }
  0x13   : > { %1029 = dma.hbm_to_vmem [thread:$0]  (!%p1432_p6), %s229_s14, 256, %s231_s20, [#allocation9], %s1350_s17, %s1350_s17, %s1351_s18  }
  0x14   : > { %s31_s30 = sadd.s32 1, %s1342_s23  ;;  %s28_s27 = ssub.s32 %s1346_s24, %s1447_s26 }
  0x15   : > { %p38_p7 = scmp.ne.s32.totalorder %s1342_s23, %s1338_s22  ;;  %p29_p8 = scmp.eq.s32.totalorder %s28_s27, 0 }
  0x16   : > { %p39_p9 = scmp.eq.s32.totalorder %s1346_s24, 0  ;;  %p44_p10 = scmp.ne.s32.totalorder %s1338_s22, %s1334_s21 }
  0x17   : > { %p173_p11 = scmp.eq.s32.totalorder %s1415_s28, 1  ;;  %p179_p0 = scmp.eq.s32.totalorder %s947_s25, 1 }
  0x18   : > { %s1459_s7 = scalar_select %p29_p8, %s1342_s23, %s31_s30  }
  0x19   : > { %p1463_p12 = por %p45_p1, %p44_p10  ;;  %p1467_p13 = por %p173_p11, %p38_p7 }
  0x1a   : > { %p40_p2 = por %p39_p9, %p38_p7  ;;  %s247_s10 = sand.u32 1, %s1342_s23  }
  0x1b   : > { %p1472_p4 = por %p179_p0, %p44_p10  ;;  %p1041_p6 = scmp.lt.s32.totalorder %s1346_s24, 2 }
  0x1c   : > { %s953_s12 = sshll.u32 %s247_s10, 2  ;;  %s954_s13 = sshll.u32 %s1346_s24, 2 }
  0x1d   : > { %s255_s16 = scalar_lea.hbm %s1610_s0, %s954_s13  ;;  %s251_s18 = scalar_lea.vmem [#allocation2], %s953_s12 }
  0x1e   : > { %s257_s17 = sshll.u32 %s255_s16, 4  ;;  %s259_s19 = sshll.u32 %s251_s18, 4  ;;  %s258_s17 = int_to_ptr.hbm [resolvable:$true] %s257_s17  ;;  %s260_s19 = int_to_ptr.vmem [resolvable:$true] %s259_s19 }
  0x1f   : > { %p1481_p8 = pnand %p1041_p6, %p40_p2  ;;  %s248_s25 = scalar_lea.sflag [#allocation3], %s247_s10 }
  0x20   : > { %s1242_s30 = sshra.s32 %s258_s17, 4  ;;  %s1249_s12 = scalar_lea.hbm %s1610_s0, 8  ;;  %s1243_s30 = int_to_ptr.hbm [resolvable:$true] %s1242_s30 }
  0x21   : > { %s1244_s27 = scalar_lea.hbm %s1243_s30, 4  ;;  %p1246_p9 = pneg %p1481_p8 }
  0x22   : > { %p1245_p7 = scmp.ne.s32.totalorder %s1243_s30, %s1244_s27  ;;  %p1250_p0 = scmp.lt.s32.totalorder %s1243_s30, %s1610_s0 }
  0x23   : > { %p1251_p2 = scmp.lt.s32.totalorder %s1249_s12, %s1244_s27 }
  0x24   : > { %p1247_p10 = pnand %p1246_p9, %p1245_p7 }
  0x25   : > { %p1252_p6 = por %p1251_p2, %p1250_p0 }
  0x26   : > { %p1248_p11 = pneg %p1247_p10 }
  0x28   : > { %p1253_p5 = pnand %p1252_p6, %p1248_p11 }
  0x2a   : > { %1256 = shalt.err (!%p1253_p5)
}
  0x2b   : > { %1033 = dma.hbm_to_vmem [thread:$0]  (!%p1481_p8), %s258_s17, 64, %s260_s19, %s248_s25  }
  0x2c   : > { %268 = sbr.rel (%p1420_p3) target bundleno = 4897 (0x1321), region = 44  ;;  %s1498_s10 = sand.u32 (!%p1420_p3), 1, %s1338_s22  }
  0x2d   : > { %s956_s18 = sshll.u32 (!%p1420_p3), %s1498_s10, 2  ;;  %s271_s13 = scalar_lea.sflag (!%p1420_p3), [#allocation3], %s1498_s10 }
  0x2e   : > { %s274_s14 = scalar_lea.vmem (!%p1420_p3), [#allocation2], %s956_s18 }
  0x31   : > { %1317 = dma.done.wait (%p1463_p12), %s271_s13, 64  }
  0x32   : > { %1319 = vsyncadd (%p1463_p12), %s271_s13, 4294967232 }
  0x33   : > { %1321 = dma.done.wait (%p45_p1), [#allocation6], 512  }
  0x34   : > { %1323 = vsyncadd (%p45_p1), [#allocation6], 4294966784 }
  0x35   : > { %1325 = dma.done.wait (%p45_p1), [#allocation9], 256  }
  0x36   : > { %1327 = vsyncadd (%p45_p1), [#allocation9], 4294967040  ;;  %v999_v0 = vld [vmem:[#allocation5 + $0x8] sm:$0xff]  ;;  %v1001_v1 = vld [vmem:[#allocation7 + $0x8] sm:$0xff]  ;;  %vm341_vm0 = vcmask 261120   ;;  %v1353_v5 = vmov 0  }
  0x37   : > { %351 = vmatpush.bf16.msra.mxu0 %v999_v0  ;;  %383 = vmatpush.bf16.msra.mxu1 %v1001_v1  ;;  %v998_v2 = vld [vmem:[#allocation5] sm:$0xff]  ;;  %v1000_v3 = vld [vmem:[#allocation7] sm:$0xff]  ;;  %v320_v4 = vld [vmem:[%s274_s14] sm:$0xf]  ;;  %s1354_s17 = smov 64   ;;  %s1355_s19 = smov 32  }
  0x38   : > { %427 = vmatpush.bf16.msra.mxu2 %v1001_v1  ;;  %479 = vmatpush.bf16.msra.mxu3 %v1001_v1  ;;  %v1086_v6 = vld [vmem:[%s1613_s3] ss:$0 sm:$0xff]  ;;  %vm775_vm1 = vcmask 1040384   ;;  %vm777_vm2 = vcmask 1041408   ;;  %vm779_vm3 = vcmask 1042432   ;;  %vm781_vm4 = vcmask 1043456  }
  0x39   : > { %vm783_vm5 = vcmask 1044480   ;;  %vm785_vm6 = vcmask 1045504   ;;  %vm787_vm7 = vcmask 1046528   ;;  %s995_s20 = sshll.u32 %s1415_s28, 3  ;;  %s960_s25 = sshll.u32 %s1498_s10, 3 }
  0x3a   : > { %s843_s12 = scalar_lea.hbm %s1616_s6, %s995_s20  ;;  %s318_s18 = scalar_lea.vmem [#allocation10], %s960_s25 }
  0x3b   : > { %352 = vmatpush.bf16.msra.mxu0 %v998_v2  ;;  %384 = vmatpush.bf16.msra.mxu1 %v1000_v3  ;;  %s845_s13 = sshll.u32 %s318_s18, 4  ;;  %s847_s14 = sshll.u32 %s843_s12, 4  ;;  %s846_s13 = int_to_ptr.vmem [resolvable:$true] %s845_s13  ;;  %s848_s14 = int_to_ptr.hbm [resolvable:$true] %s847_s14 }
  0x3c   : > { %428 = vmatpush.bf16.msra.mxu2 %v1000_v3  ;;  %480 = vmatpush.bf16.msra.mxu3 %v1000_v3  ;;  %s833_s29 = scalar_lea.sflag [#allocation4], %s1498_s10  ;;  %s1286_s28 = sshra.s32 %s848_s14, 4  ;;  %s1287_s28 = int_to_ptr.hbm [resolvable:$true] %s1286_s28 }
  0x3d   : > { %s1288_s8 = scalar_lea.hbm %s1287_s28, 8  ;;  %s1292_s20 = scalar_lea.hbm %s1616_s6, 16 }
  0x3e   : > { %969 = vmatmul.msk.bf16.vlgmr.msra.gmra.mxu0 %vm341_vm0, %v320_v4  ;;  %385 = vmatmul.bf16.vlgmr.msra.gmra.mxu1 %v1353_v5  ;;  %p1289_p1 = scmp.ne.s32.totalorder %s1287_s28, %s1288_s8  ;;  %p1293_p12 = scmp.lt.s32.totalorder %s1287_s28, %s1616_s6 }
  0x3f   : > { %530 = vmatpush.bf16.msrb.mxu0 %v1001_v1  ;;  %583 = vmatpush.bf16.msrb.mxu1 %v1001_v1  ;;  %p1294_p8 = scmp.lt.s32.totalorder %s1292_s20, %s1288_s8 }
  0x40   : > { %634 = vmatpush.bf16.msrb.mxu2 %v1001_v1  ;;  %687 = vmatpush.bf16.msrb.mxu3 %v1001_v1  ;;  %p1290_p3 = pnand %p1289_p1, %p1467_p13 }
  0x41   : > { %p1295_p7 = por %p1294_p8, %p1293_p12 }
  0x42   : > { %p1291_p5 = pneg %p1290_p3 }
  0x43   : > { %531 = vmatpush.bf16.msrb.mxu0 %v1000_v3  ;;  %584 = vmatpush.bf16.msrb.mxu1 %v1000_v3 }
  0x44   : > { %635 = vmatpush.bf16.msrb.mxu2 %v1000_v3  ;;  %688 = vmatpush.bf16.msrb.mxu3 %v1000_v3  ;;  %p1296_p9 = pnand %p1295_p7, %p1291_p5 }
  0x47   : > { %738 = vmatpush.bf16.msra.mxu0 %v1001_v1 }
  0x4b   : > { %739 = vmatpush.bf16.msra.mxu0 %v1000_v3 }
  0xbb   : > { %v354_v7 = vpop.f32.mrf.mxu0  ;;  %v386_v8 = vpop.f32.mrf.mxu1 }
  0xbc   : > { %v1518_v9 = vadd.f32 %v1086_v6, %v354_v7 }
  0xbe   : > { %v390_v10 = vadd.f32 %v386_v8, %v1518_v9 }
  0xc0   : > { %1088 = vtanh.f32 %v390_v10  ;;  %v391_v14 = vsub.f32 0.0, %v390_v10 }
  0xc2   : > { %v392_v15 = vmul.f32 1.442695, %v391_v14 }
  0xc3   : > { %v356_v11 = vpop.f32.mrf.mxu0  ;;  %v388_v12 = vpop.f32.mrf.mxu1 }
  0xc4   : > { %1090 = vpow2.f32 %v392_v15 }
  0xc6   : > { %v1089_v13 = vpop.eup %1088 }
  0xc7   : > { %399 = vrot.lane.b32.xlu0 %v1089_v13, %s1354_s17 }
  0xca   : > { %v1091_v16 = vpop.eup %1090 }
  0xcb   : > { %v394_v17 = vadd.f32 1.0, %v1091_v16 }
  0xcd   : > { %1092 = vrcp.f32 %v394_v17 }
  0xd3   : > { %v1093_v18 = vpop.eup %1092 }
  0xd4   : > { %v397_v21 = vmul.f32 0.0, %v1093_v18 }
 0x139   : > { %v400_v19 = vpop.permute.xlu0 %399 }
 0x13a   : > { %v402_v20 = vmul.f32 %v1093_v18, %v400_v19 }
 0x13c   : > { %404 = vrot.lane.b32.xlu0 %v402_v20, %s1355_s19 }
 0x1ae   : > { %v405_v22 = vpop.permute.xlu0 %404 }
 0x1af   : > { %v407_v23 = vadd.f32 %v405_v22, %v397_v21 }
 0x1b1   : > { %1094 = vtanh.f32 %v407_v23  ;;  %v445_v41 = vrot.slane %v407_v23, 7 }
 0x1b7   : > { %v1095_v24 = vpop.eup %1094 }
 0x1b8   : > { %410 = vrot.lane.b32.xlu1 %v1095_v24, %s1354_s17 }
 0x22a   : > { %v411_v25 = vpop.permute.xlu1 %410 }
 0x22b   : > { %v1524_v26 = vmul.f32 %v1093_v18, %v411_v25 }
 0x22d   : > { %v414_v27 = vpack.c.bf16 %v1524_v26, %v1524_v26 }
 0x22f   : > { %416 = vrot.lane.b32.xlu1 %v414_v27, %s1355_s19 }
 0x2a1   : > { %v417_v28 = vpop.permute.xlu1 %416 }
 0x2a2   : > { %978 = vmatmul.msk.bf16.vlgmr.msra.gmra.mxu2 %vm341_vm0, %v417_v28 }
 0x325   : > { %v430_v29 = vpop.f32.mrf.mxu2 }
 0x326   : > { %v435_v30 = vrot.slane %v430_v29, 7 }
 0x328   : > { %v437_v31 = vadd.f32 %v435_v30, %v1518_v9 }
 0x32a   : > { %1096 = vtanh.f32 %v437_v31  ;;  %v438_v34 = vsub.f32 0.0, %v437_v31 }
 0x32c   : > { %v439_v35 = vmul.f32 1.442695, %v438_v34 }
 0x32d   : > { %v432_v32 = vpop.f32.mrf.mxu2 }
 0x32e   : > { %1098 = vpow2.f32 %v439_v35 }
 0x330   : > { %v1097_v33 = vpop.eup %1096 }
 0x331   : > { %449 = vrot.lane.b32.xlu2 %v1097_v33, %s1354_s17 }
 0x334   : > { %v1099_v36 = vpop.eup %1098 }
 0x335   : > { %v441_v37 = vadd.f32 1.0, %v1099_v36 }
 0x337   : > { %1100 = vrcp.f32 %v441_v37 }
 0x33d   : > { %v1101_v38 = vpop.eup %1100 }
 0x33e   : > { %v447_v42 = vmul.f32 %v1101_v38, %v445_v41 }
 0x38b   : > { %v450_v39 = vpop.permute.xlu2 %449 }
 0x38c   : > { %v452_v40 = vmul.f32 %v1101_v38, %v450_v39 }
 0x38e   : > { %454 = vrot.lane.b32.xlu2 %v452_v40, %s1355_s19 }
 0x3e8   : > { %v455_v43 = vpop.permute.xlu2 %454 }
 0x3e9   : > { %v457_v44 = vadd.f32 %v455_v43, %v447_v42 }
 0x3eb   : > { %1102 = vtanh.f32 %v457_v44  ;;  %v497_v63 = vrot.slane %v457_v44, 7 }
 0x3f1   : > { %v1103_v45 = vpop.eup %1102 }
 0x3f2   : > { %460 = vrot.lane.b32.xlu0 %v1103_v45, %s1354_s17 }
 0x464   : > { %v461_v46 = vpop.permute.xlu0 %460 }
 0x465   : > { %v463_v47 = vmul.f32 %v1101_v38, %v461_v46 }
 0x467   : > { %v464_v48 = vpack.c.bf16 %v463_v47, %v463_v47  ;;  %v776_v6 = vsel %vm775_vm1, %v1524_v26, %v463_v47 }
 0x469   : > { %v466_v49 = vshrl.u32 %v464_v48, 16 }
 0x46b   : > { %468 = vrot.lane.b32.xlu1 %v466_v49, %s1355_s19 }
 0x4dd   : > { %v469_v50 = vpop.permute.xlu1 %468 }
 0x4de   : > { %979 = vmatmul.msk.bf16.vlgmr.msra.gmra.mxu3 %vm341_vm0, %v469_v50 }
 0x561   : > { %v482_v51 = vpop.f32.mrf.mxu3 }
 0x562   : > { %v487_v52 = vrot.slane %v482_v51, 6 }
 0x564   : > { %v489_v53 = vadd.f32 %v487_v52, %v1518_v9 }
 0x566   : > { %1104 = vtanh.f32 %v489_v53  ;;  %v490_v56 = vsub.f32 0.0, %v489_v53 }
 0x568   : > { %v491_v57 = vmul.f32 1.442695, %v490_v56 }
 0x569   : > { %v484_v54 = vpop.f32.mrf.mxu3 }
 0x56a   : > { %1106 = vpow2.f32 %v491_v57 }
 0x56c   : > { %v1105_v55 = vpop.eup %1104 }
 0x56d   : > { %501 = vrot.lane.b32.xlu2 %v1105_v55, %s1354_s17 }
 0x570   : > { %v1107_v58 = vpop.eup %1106 }
 0x571   : > { %v493_v59 = vadd.f32 1.0, %v1107_v58 }
 0x573   : > { %1108 = vrcp.f32 %v493_v59 }
 0x579   : > { %v1109_v60 = vpop.eup %1108 }
 0x57a   : > { %v499_v0 = vmul.f32 %v1109_v60, %v497_v63 }
 0x5c7   : > { %v502_v61 = vpop.permute.xlu2 %501 }
 0x5c8   : > { %v504_v62 = vmul.f32 %v1109_v60, %v502_v61 }
 0x5ca   : > { %506 = vrot.lane.b32.xlu0 %v504_v62, %s1355_s19 }
 0x63c   : > { %v507_v1 = vpop.permute.xlu0 %506 }
 0x63d   : > { %v509_v2 = vadd.f32 %v507_v1, %v499_v0 }
 0x63f   : > { %1110 = vtanh.f32 %v509_v2  ;;  %v548_v24 = vrot.slane %v509_v2, 7 }
 0x645   : > { %v1111_v3 = vpop.eup %1110 }
 0x646   : > { %512 = vrot.lane.b32.xlu1 %v1111_v3, %s1354_s17 }
 0x6b8   : > { %v513_v4 = vpop.permute.xlu1 %512 }
 0x6b9   : > { %v515_v5 = vmul.f32 %v1109_v60, %v513_v4 }
 0x6bb   : > { %v516_v7 = vpack.c.bf16 %v515_v5, %v515_v5  ;;  %v778_v8 = vsel %vm777_vm2, %v776_v6, %v515_v5 }
 0x6bd   : > { %v518_v10 = vrot.slane %v516_v7, 1 }
 0x6bf   : > { %519 = vrot.lane.b32.xlu2 %v518_v10, %s1355_s19 }
 0x719   : > { %v520_v11 = vpop.permute.xlu2 %519 }
 0x71a   : > { %980 = vmatmul.msk.bf16.vlgmr.msrb.gmra.mxu0 %vm341_vm0, %v520_v11 }
 0x797   : > { %v533_v12 = vpop.f32.mrf.mxu0 }
 0x798   : > { %v538_v13 = vrot.slane %v533_v12, 5 }
 0x79a   : > { %v540_v14 = vadd.f32 %v538_v13, %v1518_v9 }
 0x79c   : > { %1112 = vtanh.f32 %v540_v14  ;;  %v541_v17 = vsub.f32 0.0, %v540_v14 }
 0x79e   : > { %v542_v18 = vmul.f32 1.442695, %v541_v17 }
 0x79f   : > { %v535_v15 = vpop.f32.mrf.mxu0 }
 0x7a0   : > { %1114 = vpow2.f32 %v542_v18 }
 0x7a2   : > { %v1113_v16 = vpop.eup %1112 }
 0x7a3   : > { %552 = vrot.lane.b32.xlu0 %v1113_v16, %s1354_s17 }
 0x7a6   : > { %v1115_v19 = vpop.eup %1114 }
 0x7a7   : > { %v544_v20 = vadd.f32 1.0, %v1115_v19 }
 0x7a9   : > { %1116 = vrcp.f32 %v544_v20 }
 0x7af   : > { %v1117_v21 = vpop.eup %1116 }
 0x7b0   : > { %v550_v25 = vmul.f32 %v1117_v21, %v548_v24 }
 0x815   : > { %v553_v22 = vpop.permute.xlu0 %552 }
 0x816   : > { %v555_v23 = vmul.f32 %v1117_v21, %v553_v22 }
 0x818   : > { %557 = vrot.lane.b32.xlu1 %v555_v23, %s1355_s19 }
 0x88a   : > { %v558_v26 = vpop.permute.xlu1 %557 }
 0x88b   : > { %v560_v27 = vadd.f32 %v558_v26, %v550_v25 }
 0x88d   : > { %1118 = vtanh.f32 %v560_v27  ;;  %v601_v48 = vrot.slane %v560_v27, 7 }
 0x893   : > { %v1119_v28 = vpop.eup %1118 }
 0x894   : > { %563 = vrot.lane.b32.xlu2 %v1119_v28, %s1354_s17 }
 0x8ee   : > { %v564_v29 = vpop.permute.xlu2 %563 }
 0x8ef   : > { %v566_v30 = vmul.f32 %v1117_v21, %v564_v29 }
 0x8f1   : > { %v567_v31 = vpack.c.bf16 %v566_v30, %v566_v30  ;;  %v780_v32 = vsel %vm779_vm3, %v778_v8, %v566_v30 }
 0x8f3   : > { %v569_v33 = vshrl.u32 %v567_v31, 16 }
 0x8f5   : > { %v571_v34 = vrot.slane %v569_v33, 1 }
 0x8f7   : > { %572 = vrot.lane.b32.xlu0 %v571_v34, %s1355_s19 }
 0x969   : > { %v573_v35 = vpop.permute.xlu0 %572 }
 0x96a   : > { %981 = vmatmul.msk.bf16.vlgmr.msrb.gmra.mxu1 %vm341_vm0, %v573_v35 }
 0x9e7   : > { %v586_v36 = vpop.f32.mrf.mxu1 }
 0x9e8   : > { %v591_v37 = vrot.slane %v586_v36, 4 }
 0x9ea   : > { %v593_v38 = vadd.f32 %v591_v37, %v1518_v9 }
 0x9ec   : > { %1120 = vtanh.f32 %v593_v38  ;;  %v594_v41 = vsub.f32 0.0, %v593_v38 }
 0x9ee   : > { %v595_v42 = vmul.f32 1.442695, %v594_v41 }
 0x9ef   : > { %v588_v39 = vpop.f32.mrf.mxu1 }
 0x9f0   : > { %1122 = vpow2.f32 %v595_v42 }
 0x9f2   : > { %v1121_v40 = vpop.eup %1120 }
 0x9f3   : > { %605 = vrot.lane.b32.xlu1 %v1121_v40, %s1354_s17 }
 0x9f6   : > { %v1123_v43 = vpop.eup %1122 }
 0x9f7   : > { %v597_v44 = vadd.f32 1.0, %v1123_v43 }
 0x9f9   : > { %1124 = vrcp.f32 %v597_v44 }
 0x9ff   : > { %v1125_v45 = vpop.eup %1124 }
 0xa00   : > { %v603_v49 = vmul.f32 %v1125_v45, %v601_v48 }
 0xa65   : > { %v606_v46 = vpop.permute.xlu1 %605 }
 0xa66   : > { %v608_v47 = vmul.f32 %v1125_v45, %v606_v46 }
 0xa68   : > { %610 = vrot.lane.b32.xlu2 %v608_v47, %s1355_s19 }
 0xac2   : > { %v611_v50 = vpop.permute.xlu2 %610 }
 0xac3   : > { %v613_v51 = vadd.f32 %v611_v50, %v603_v49 }
 0xac5   : > { %1126 = vtanh.f32 %v613_v51  ;;  %v652_v7 = vrot.slane %v613_v51, 7 }
 0xacb   : > { %v1127_v52 = vpop.eup %1126 }
 0xacc   : > { %616 = vrot.lane.b32.xlu0 %v1127_v52, %s1354_s17 }
 0xb3e   : > { %v617_v53 = vpop.permute.xlu0 %616 }
 0xb3f   : > { %v619_v54 = vmul.f32 %v1125_v45, %v617_v53 }
 0xb41   : > { %v620_v55 = vpack.c.bf16 %v619_v54, %v619_v54  ;;  %v782_v56 = vsel %vm781_vm4, %v780_v32, %v619_v54 }
 0xb43   : > { %v622_v57 = vrot.slane %v620_v55, 2 }
 0xb45   : > { %623 = vrot.lane.b32.xlu1 %v622_v57, %s1355_s19 }
 0xbb7   : > { %v624_v58 = vpop.permute.xlu1 %623 }
 0xbb8   : > { %982 = vmatmul.msk.bf16.vlgmr.msrb.gmra.mxu2 %vm341_vm0, %v624_v58 }
 0xc3b   : > { %v637_v59 = vpop.f32.mrf.mxu2 }
 0xc3c   : > { %v642_v60 = vrot.slane %v637_v59, 3  ;;  %v1003_v59 = vld [vmem:[#allocation8 + $0x8] sm:$0xff] }
 0xc3d   : > { %824 = vmatpush.bf16.msra.mxu1 %v1003_v59 }
 0xc3e   : > { %v644_v61 = vadd.f32 %v642_v60, %v1518_v9  ;;  %v1002_v60 = vld [vmem:[#allocation8] sm:$0xff] }
 0xc40   : > { %1128 = vtanh.f32 %v644_v61  ;;  %v645_v0 = vsub.f32 0.0, %v644_v61 }
 0xc41   : > { %825 = vmatpush.bf16.msra.mxu1 %v1002_v60 }
 0xc42   : > { %v646_v1 = vmul.f32 1.442695, %v645_v0 }
 0xc43   : > { %v639_v62 = vpop.f32.mrf.mxu2 }
 0xc44   : > { %1130 = vpow2.f32 %v646_v1 }
 0xc46   : > { %v1129_v63 = vpop.eup %1128 }
 0xc47   : > { %656 = vrot.lane.b32.xlu2 %v1129_v63, %s1354_s17 }
 0xc4a   : > { %v1131_v2 = vpop.eup %1130 }
 0xc4b   : > { %v648_v3 = vadd.f32 1.0, %v1131_v2 }
 0xc4d   : > { %1132 = vrcp.f32 %v648_v3 }
 0xc53   : > { %v1133_v4 = vpop.eup %1132 }
 0xc54   : > { %v654_v8 = vmul.f32 %v1133_v4, %v652_v7 }
 0xca1   : > { %v657_v5 = vpop.permute.xlu2 %656 }
 0xca2   : > { %v659_v6 = vmul.f32 %v1133_v4, %v657_v5 }
 0xca4   : > { %661 = vrot.lane.b32.xlu0 %v659_v6, %s1355_s19 }
 0xd16   : > { %v662_v10 = vpop.permute.xlu0 %661 }
 0xd17   : > { %v664_v11 = vadd.f32 %v662_v10, %v654_v8 }
 0xd19   : > { %1134 = vtanh.f32 %v664_v11  ;;  %v705_v32 = vrot.slane %v664_v11, 7 }
 0xd1f   : > { %v1135_v12 = vpop.eup %1134 }
 0xd20   : > { %667 = vrot.lane.b32.xlu1 %v1135_v12, %s1354_s17 }
 0xd92   : > { %v668_v13 = vpop.permute.xlu1 %667 }
 0xd93   : > { %v670_v14 = vmul.f32 %v1133_v4, %v668_v13  ;;  %v1087_v4 = vld [vmem:[%s1615_s5] ss:$0 sm:$0xff] }
 0xd95   : > { %v671_v15 = vpack.c.bf16 %v670_v14, %v670_v14  ;;  %v784_v16 = vsel %vm783_vm5, %v782_v56, %v670_v14 }
 0xd97   : > { %v673_v17 = vshrl.u32 %v671_v15, 16 }
 0xd99   : > { %v675_v18 = vrot.slane %v673_v17, 2 }
 0xd9b   : > { %676 = vrot.lane.b32.xlu2 %v675_v18, %s1355_s19 }
 0xdf5   : > { %v677_v19 = vpop.permute.xlu2 %676 }
 0xdf6   : > { %983 = vmatmul.msk.bf16.vlgmr.msrb.gmra.mxu3 %vm341_vm0, %v677_v19 }
 0xe79   : > { %v690_v20 = vpop.f32.mrf.mxu3 }
 0xe7a   : > { %v695_v21 = vrot.slane %v690_v20, 2 }
 0xe7c   : > { %v697_v22 = vadd.f32 %v695_v21, %v1518_v9 }
 0xe7e   : > { %1136 = vtanh.f32 %v697_v22  ;;  %v698_v25 = vsub.f32 0.0, %v697_v22 }
 0xe80   : > { %v699_v26 = vmul.f32 1.442695, %v698_v25 }
 0xe81   : > { %v692_v23 = vpop.f32.mrf.mxu3 }
 0xe82   : > { %1138 = vpow2.f32 %v699_v26 }
 0xe84   : > { %v1137_v24 = vpop.eup %1136 }
 0xe85   : > { %709 = vrot.lane.b32.xlu0 %v1137_v24, %s1354_s17 }
 0xe88   : > { %v1139_v27 = vpop.eup %1138 }
 0xe89   : > { %v701_v28 = vadd.f32 1.0, %v1139_v27 }
 0xe8b   : > { %1140 = vrcp.f32 %v701_v28 }
 0xe91   : > { %v1141_v29 = vpop.eup %1140 }
 0xe92   : > { %v707_v33 = vmul.f32 %v1141_v29, %v705_v32 }
 0xef7   : > { %v710_v30 = vpop.permute.xlu0 %709 }
 0xef8   : > { %v712_v31 = vmul.f32 %v1141_v29, %v710_v30 }
 0xefa   : > { %714 = vrot.lane.b32.xlu1 %v712_v31, %s1355_s19 }
 0xf6c   : > { %v715_v34 = vpop.permute.xlu1 %714 }
 0xf6d   : > { %v717_v35 = vadd.f32 %v715_v34, %v707_v33 }
 0xf6f   : > { %1142 = vtanh.f32 %v717_v35  ;;  %v756_v55 = vrot.slane %v717_v35, 7 }
 0xf75   : > { %v1143_v36 = vpop.eup %1142 }
 0xf76   : > { %720 = vrot.lane.b32.xlu2 %v1143_v36, %s1354_s17 }
 0xfd0   : > { %v721_v37 = vpop.permute.xlu2 %720 }
 0xfd1   : > { %v723_v38 = vmul.f32 %v1141_v29, %v721_v37 }
 0xfd3   : > { %v724_v39 = vpack.c.bf16 %v723_v38, %v723_v38  ;;  %v786_v40 = vsel %vm785_vm6, %v784_v16, %v723_v38 }
 0xfd5   : > { %v726_v41 = vrot.slane %v724_v39, 3 }
 0xfd7   : > { %727 = vrot.lane.b32.xlu0 %v726_v41, %s1355_s19 }
0x1049   : > { %v728_v42 = vpop.permute.xlu0 %727 }
0x104a   : > { %984 = vmatmul.msk.bf16.vlgmr.msra.gmra.mxu0 %vm341_vm0, %v728_v42 }
0x10c7   : > { %v741_v43 = vpop.f32.mrf.mxu0 }
0x10c8   : > { %v746_v44 = vrot.slane %v741_v43, 1 }
0x10ca   : > { %v748_v45 = vadd.f32 %v746_v44, %v1518_v9 }
0x10cc   : > { %1144 = vtanh.f32 %v748_v45  ;;  %v749_v48 = vsub.f32 0.0, %v748_v45 }
0x10ce   : > { %v750_v49 = vmul.f32 1.442695, %v749_v48 }
0x10cf   : > { %v743_v46 = vpop.f32.mrf.mxu0 }
0x10d0   : > { %1146 = vpow2.f32 %v750_v49 }
0x10d2   : > { %v1145_v47 = vpop.eup %1144 }
0x10d3   : > { %760 = vrot.lane.b32.xlu1 %v1145_v47, %s1354_s17 }
0x10d6   : > { %v1147_v50 = vpop.eup %1146 }
0x10d7   : > { %v752_v51 = vadd.f32 1.0, %v1147_v50 }
0x10d9   : > { %1148 = vrcp.f32 %v752_v51 }
0x10df   : > { %v1149_v52 = vpop.eup %1148 }
0x10e0   : > { %v758_v56 = vmul.f32 %v1149_v52, %v756_v55 }
0x1145   : > { %v761_v53 = vpop.permute.xlu1 %760 }
0x1146   : > { %v763_v54 = vmul.f32 %v1149_v52, %v761_v53 }
0x1148   : > { %765 = vrot.lane.b32.xlu2 %v763_v54, %s1355_s19 }
0x11a2   : > { %v766_v57 = vpop.permute.xlu2 %765 }
0x11a3   : > { %v768_v9 = vadd.f32 %v766_v57, %v758_v56 }
0x11a5   : > { %1150 = vtanh.f32 %v768_v9 }
0x11ab   : > { %v1151_v58 = vpop.eup %1150 }
0x11ac   : > { %771 = vrot.lane.b32.xlu0 %v1151_v58, %s1354_s17 }
0x121e   : > { %v772_v61 = vpop.permute.xlu0 %771 }
0x121f   : > { %v774_v62 = vmul.f32 %v1149_v52, %v772_v61 }
0x1221   : > { %v788_v63 = vsel %vm787_vm7, %v786_v40, %v774_v62 }
0x1222   : > { %v789_v0 = vpack.c.bf16 %v788_v63, %v788_v63 }
0x1224   : > { %v799_v1 = vunpack.c.l.b16 %v789_v0 }
0x1226   : > { %v800_v2 = vpack.c.b16 %v799_v1, %v799_v1 }
0x1228   : > { %801 = vrot.lane.b32.xlu1 %v800_v2, %s1355_s19 }
0x129a   : > { %v802_v3 = vpop.permute.xlu1 %801 }
0x129b   : > { %993 = vmatmul.msk.bf16.vlgmr.msra.gmra.mxu1 %vm341_vm0, %v802_v3 }
0x1318   : > { %v827_v5 = vpop.f32.mrf.mxu1 }
0x1319   : > { %v828_v6 = vadd.f32 %v1087_v4, %v827_v5 }
0x131b   : > { %831 = vst [vmem:[%s318_s18] sm:$0xff] %v828_v6 }
0x131c   : > { %1299 = shalt.err (!%p1296_p9)
}
0x131d   : > { %1018 = dma.vmem_to_hbm [thread:$0]  (%p1467_p13), %s846_s13, 128, %s848_s14, %s833_s29  }
0x1320   : > { %v829_v7 = vpop.f32.mrf.mxu1 }
0x1321 PF: > { %s859_s10 = sand.u32 1, %s1334_s21   ;;  %p1623_p10 = scmp.ge.s32.totalorder %s1346_s24, 2 }
0x1322   : > { %s860_s27 = scalar_lea.sflag [#allocation4], %s859_s10 }
0x1323   : > { %p1035_p11 = pnand %p1623_p10, %p1472_p4 }
0x1325   : > { %p1036_p0 = pneg %p1035_p11 }
0x1327   : > { %1329 = dma.done.wait (%p1036_p0), %s860_s27, 128  }
0x1328   : > { %1331 = vsyncadd (%p1036_p0), %s860_s27, 4294967168  ;;  %p21_p2 = scmp.ge.s32.totalorder %s1447_s26, 4   ;;  %s1624_s21 = smov %s1338_s22 }
0x1329   : > { %s1625_s22 = smov %s1342_s23  ;;  %s1626_s23 = smov %s1459_s7 }
0x132a   : > { %s1627_s24 = smov %s1447_s26  ;;  %23 = sbr.rel (!%p21_p2) target bundleno = 7 (0x7), region = 101 }
0x132f   :  { %866 = vsyncpa [#allocation3], 1 }
0x1330   :  { %868 = vsyncpa [#allocation3 + $0x1], 1 }
0x1331   :  { %869 = vsyncpa [#allocation6], 1 }
0x1332   :  { %870 = vsyncpa [#allocation9], 1 }
0x1333   :  { %871 = vsyncpa [#allocation4], 1 }
0x1334   :  { %873 = vsyncpa [#allocation4 + $0x1], 1 }

</bundles_post_ra>
